<compile_context>
chip_gen: v5e
topology: v5e:2x2
jax: 0.10.0
libtpu: 0.0.40
codegen_flags: <defaults>
</compile_context>

<pallas_src>
import jax
import jax.numpy as jnp
from jax.experimental import pallas as pl
from jax.experimental.pallas import tpu as pltpu

NUM_GROUPS = 32
EPS = 1e-5


def _silu(v):
    # sigmoid via a single EUP tanh push: sigmoid(v) = 0.5*(tanh(v/2)+1)
    return v * (0.5 * (jnp.tanh(0.5 * v) + 1.0))


def _resblock_kernel(x_ref, emb_ref, ohs_ref, oht1_ref, oht2_ref,
                     b1_ref, w_ref, bl_ref, b2_ref, out_ref):
    x = x_ref[...].astype(jnp.float32)                      # [TB, C]
    onehot_s = ohs_ref[...]                                  # [C, G]  (already / group_size)

    def group_norm(h, oht_g, beta):
        # Two separate MXU dots (no sublane concat -> no extra VMEM copy).
        mean = jnp.dot(h, onehot_s, preferred_element_type=jnp.float32)       # [TB, G]
        ex2 = jnp.dot(h * h, onehot_s, preferred_element_type=jnp.float32)    # [TB, G]
        # TODO(synk): one-pass variance (E[x^2]-E[x]^2) can lose precision for very
        # large-magnitude activations; keep these stats dots in f32 (do not bf16).
        inv_std = jax.lax.rsqrt(ex2 - mean * mean + EPS)                      # [TB, G]
        # gamma is pre-folded into oht_g, so normalize + affine is a single FMA.
        # TODO(synk): on v5e these two back-broadcast dots could go bf16 if MXU-bound.
        scale_c = jnp.dot(inv_std, oht_g, preferred_element_type=jnp.float32)  # [TB, C]
        shift_c = beta - jnp.dot(mean * inv_std, oht_g,
                                 preferred_element_type=jnp.float32)           # [TB, C]
        return h * scale_c + shift_c

    # in_layers: GroupNorm32 + SiLU
    h = _silu(group_norm(x, oht1_ref[...], b1_ref[...]))

    # emb_layers: SiLU + Linear(E -> C), bf16 MXU with f32 accumulation
    e = _silu(emb_ref[...].astype(jnp.float32)).astype(jnp.bfloat16)
    h = h + jnp.dot(e, w_ref[...], preferred_element_type=jnp.float32) + bl_ref[...]

    # out_layers: GroupNorm32 + SiLU + Dropout(p=0) (identity)
    h = _silu(group_norm(h, oht2_ref[...], b2_ref[...]))

    # skip_connection = Identity
    out_ref[...] = (x + h).astype(out_ref.dtype)


def _round_up(v, m):
    return ((v + m - 1) // m) * m


def _vmem_cap_bytes():
    try:
        cap = getattr(pltpu.get_tpu_info(), "vmem_capacity_bytes", None)
        if cap:
            return int(cap)
    except Exception:
        pass
    return 64 << 20  # conservative default: v7x per-TensorCore VMEM


def resblock_forward(x, emb, params, *, tile_b=None, interpret=False):
    """x: [B, C], emb: [B, E]. Returns [B, C] in x.dtype."""
    B, C = x.shape
    E = emb.shape[1]
    assert C % NUM_GROUPS == 0, f"C={C} must be divisible by {NUM_GROUPS}"
    gs = C // NUM_GROUPS

    # --- Resident constants, built ONCE in the wrapper -----------------------
    groups = jnp.arange(C)[:, None] // gs == jnp.arange(NUM_GROUPS)[None, :]
    onehot_s = groups.astype(jnp.float32) / gs               # [C, G]: folds 1/group_size
    onehot_t = groups.T.astype(jnp.float32)                   # [G, C]
    oht1 = onehot_t * params["gn1_gamma"].astype(jnp.float32)  # gamma folded (GN1)
    oht2 = onehot_t * params["gn2_gamma"].astype(jnp.float32)  # gamma folded (GN2)
    lin_w = params["lin_w"].astype(jnp.bfloat16)               # bf16 MXU path

    x_it = jnp.dtype(x.dtype).itemsize
    e_it = jnp.dtype(emb.dtype).itemsize
    resident_bytes = (lin_w.size * 2
                      + (onehot_s.size + oht1.size + oht2.size) * 4
                      + 3 * C * 4)                             # b1 / lin_b / b2

    # --- Batch-tile sizing: fit double-buffered streams + f32 temporaries ----
    vmem_cap = _vmem_cap_bytes()

    def footprint(tb):
        streamed = 2 * (2 * tb * C * x_it + tb * E * e_it)     # dbl-buffered x/out/emb tiles
        temps = 6 * tb * C * 4                                 # in-kernel f32 temporaries
        return streamed + temps

    tb = tile_b if tile_b is not None else 512
    budget = vmem_cap - (12 << 20) - resident_bytes
    while tb > 8 and footprint(tb) > budget:
        tb //= 2
    tb = max(8, tb)

    # --- Avoid pad/unpad HBM copies: pick a tile that divides B if possible --
    if B <= tb:
        tb = B                                                 # single block (full batch dim)
    elif B % tb != 0:
        cand = (tb // 8) * 8
        while cand >= 8 and B % cand != 0:
            cand -= 8
        if cand >= 8:
            tb = cand

    if B % tb == 0:
        x_in, emb_in, Bp = x, emb, B
    else:
        # TODO(synk): ragged last tile via in-kernel masked store would avoid this
        # extra HBM pass; fallback padding only hits when B has no usable divisor.
        Bp = _round_up(B, tb)
        x_in = jnp.zeros((Bp, C), x.dtype).at[:B].set(x)
        emb_in = jnp.zeros((Bp, E), emb.dtype).at[:B].set(emb)
    grid = (Bp // tb,)

    needed = footprint(tb) + resident_bytes + (4 << 20)
    vmem_limit = int(min(max(needed, 32 << 20), vmem_cap - (6 << 20)))

    flops = int(Bp * (16 * C * NUM_GROUPS + 2 * E * C + 20 * C))
    transcendentals = int(Bp * (2 * C + E))
    bytes_accessed = int(Bp * C * x_it * 2 + Bp * E * e_it + resident_bytes)

    tiled = lambda shape: pl.BlockSpec(shape, lambda i: (i, 0))
    resident = lambda shape: pl.BlockSpec(shape, lambda i: (0, 0))

    out = pl.pallas_call(
        _resblock_kernel,
        out_shape=jax.ShapeDtypeStruct((Bp, C), x.dtype),
        grid=grid,
        in_specs=[
            tiled((tb, C)),                    # x       (streamed per step)
            tiled((tb, E)),                    # emb     (streamed per step)
            resident((C, NUM_GROUPS)),         # onehot / group_size
            resident((NUM_GROUPS, C)),         # onehot.T * gamma1
            resident((NUM_GROUPS, C)),         # onehot.T * gamma2
            resident((1, C)),                  # gn1 beta
            resident((E, C)),                  # lin_w (bf16)
            resident((1, C)),                  # lin_b
            resident((1, C)),                  # gn2 beta
        ],
        out_specs=tiled((tb, C)),
        compiler_params=pltpu.CompilerParams(
            dimension_semantics=("parallel",),
            vmem_limit_bytes=vmem_limit),
        cost_estimate=pl.CostEstimate(
            flops=flops, transcendentals=transcendentals,
            bytes_accessed=bytes_accessed),
        interpret=interpret,
    )(x_in, emb_in, onehot_s, oht1, oht2,
      params["gn1_beta"], lin_w, params["lin_b"], params["gn2_beta"])

    return out[:B] if Bp != B else out


def make_params(in_channels, emb_channels, key):
    """Deterministic synthetic parameters (PyTorch-default-style init)."""
    C, E = in_channels, emb_channels
    k_w, k_b = jax.random.split(key)
    bound = 1.0 / jnp.sqrt(E)
    w = jax.random.uniform(k_w, (E, C), jnp.float32, -bound, bound)
    return {
        "gn1_gamma": jnp.ones((1, C), jnp.float32),
        "gn1_beta": jnp.zeros((1, C), jnp.float32),
        # nn.Linear(E, C): stored pre-transposed [E, C], bf16 for the MXU path.
        "lin_w": w.astype(jnp.bfloat16),
        "lin_b": jax.random.uniform(k_b, (1, C), jnp.float32, -bound, bound),
        "gn2_gamma": jnp.ones((1, C), jnp.float32),
        "gn2_beta": jnp.zeros((1, C), jnp.float32),
    }


def resblock_reference(x, emb, params, *, bf16_linear=False):
    """Pure-JAX reference of the PyTorch forward."""
    C = x.shape[1]
    gs = C // NUM_GROUPS

    def gn(h, gamma, beta):
        hg = h.reshape(h.shape[0], NUM_GROUPS, gs)
        mean = hg.mean(-1, keepdims=True)
        var = hg.var(-1, keepdims=True)
        hn = ((hg - mean) / jnp.sqrt(var + EPS)).reshape(h.shape)
        return hn * gamma + beta

    silu = lambda v: v * jax.nn.sigmoid(v)
    h = silu(gn(x, params["gn1_gamma"], params["gn1_beta"]))
    se = silu(emb)
    if bf16_linear:  # mirrors the kernel's bf16 MXU linear exactly
        e = jnp.dot(se.astype(jnp.bfloat16), params["lin_w"],
                    preferred_element_type=jnp.float32) + params["lin_b"]
    else:
        e = se @ params["lin_w"].astype(jnp.float32) + params["lin_b"]
    h = h + e
    h = silu(gn(h, params["gn2_gamma"], params["gn2_beta"]))
    return x + h


if __name__ == "__main__":
    # C multiple of 128 (lane-dense stores); B multiple of the tile so the
    # no-padding, 2-step grid path is exercised.
    B, C, E = 16, 128, 64
    key = jax.random.PRNGKey(0)
    kx, ke, kp = jax.random.split(key, 3)
    x = jax.random.normal(kx, (B, C), jnp.float32)
    emb = jax.random.normal(ke, (B, E), jnp.float32)
    params = make_params(C, E, kp)

    out = resblock_forward(x, emb, params, tile_b=8)
    out = jax.block_until_ready(out)
    assert out.shape == (B, C)

    # Tight check vs a reference that mirrors the kernel's bf16 linear.
    ref_match = resblock_reference(x, emb, params, bf16_linear=True)
    assert jnp.allclose(out, ref_match, atol=2e-4, rtol=2e-4), "mismatch vs matched reference"
    # Looser check vs the all-f32 reference (bf16 linear rounding only).
    ref_f32 = resblock_reference(x, emb, params, bf16_linear=False)
    assert jnp.allclose(out, ref_f32, atol=1e-2, rtol=1e-2), "mismatch vs f32 reference"

    print("KERNEL_OK")
</pallas_src>

<mosaic_0001>
module attributes {stable_mosaic.version = 11 : i64} {
  func.func @_resblock_kernel(%arg0: i32, %arg1: memref<8x128xf32, #tpu.memory_space<vmem>>, %arg2: memref<8x64xf32, #tpu.memory_space<vmem>>, %arg3: memref<128x32xf32, #tpu.memory_space<vmem>>, %arg4: memref<32x128xf32, #tpu.memory_space<vmem>>, %arg5: memref<32x128xf32, #tpu.memory_space<vmem>>, %arg6: memref<1x128xf32, #tpu.memory_space<vmem>>, %arg7: memref<64x128xbf16, #tpu.memory_space<vmem>>, %arg8: memref<1x128xf32, #tpu.memory_space<vmem>>, %arg9: memref<1x128xf32, #tpu.memory_space<vmem>>, %arg10: memref<8x128xf32, #tpu.memory_space<vmem>>) attributes {dimension_semantics = [#tpu.dimension_semantics<parallel>], iteration_bounds = array<i64: 2>, scalar_prefetch = 0 : i64, scratch_operands = 0 : i64, tpu.core_type = #tpu.core_type<tc>, window_params = [{transform_indices = @transform_0, window_bounds = array<i64: 8, 128>}, {transform_indices = @transform_1, window_bounds = array<i64: 8, 64>}, {pipeline_mode = #tpu.pipeline_mode<synchronous>, transform_indices = @transform_2, window_bounds = array<i64: 128, 32>}, {pipeline_mode = #tpu.pipeline_mode<synchronous>, transform_indices = @transform_3, window_bounds = array<i64: 32, 128>}, {pipeline_mode = #tpu.pipeline_mode<synchronous>, transform_indices = @transform_4, window_bounds = array<i64: 32, 128>}, {pipeline_mode = #tpu.pipeline_mode<synchronous>, transform_indices = @transform_5, window_bounds = array<i64: 1, 128>}, {pipeline_mode = #tpu.pipeline_mode<synchronous>, transform_indices = @transform_6, window_bounds = array<i64: 64, 128>}, {pipeline_mode = #tpu.pipeline_mode<synchronous>, transform_indices = @transform_7, window_bounds = array<i64: 1, 128>}, {pipeline_mode = #tpu.pipeline_mode<synchronous>, transform_indices = @transform_8, window_bounds = array<i64: 1, 128>}, {transform_indices = @transform_9, window_bounds = array<i64: 8, 128>}]} {
    %c0 = arith.constant 0 : index
    %c0_0 = arith.constant 0 : index
    %0 = vector.load %arg1[%c0, %c0_0] : memref<8x128xf32, #tpu.memory_space<vmem>>, vector<8x128xf32>
    %c0_1 = arith.constant 0 : index
    %c0_2 = arith.constant 0 : index
    %1 = vector.load %arg3[%c0_1, %c0_2] : memref<128x32xf32, #tpu.memory_space<vmem>>, vector<128x32xf32>
    %c0_3 = arith.constant 0 : index
    %c0_4 = arith.constant 0 : index
    %2 = vector.load %arg4[%c0_3, %c0_4] : memref<32x128xf32, #tpu.memory_space<vmem>>, vector<32x128xf32>
    %c0_5 = arith.constant 0 : index
    %c0_6 = arith.constant 0 : index
    %3 = vector.load %arg6[%c0_5, %c0_6] : memref<1x128xf32, #tpu.memory_space<vmem>>, vector<1x128xf32>
    %cst = arith.constant dense<0.000000e+00> : vector<8x32xf32>
    %4 = tpu.matmul %0, %1, %cst {dimension_numbers = #tpu.dot_dimension_numbers<[1], [0], [0], [1], [0, 0, 1, 1], [], []>} : vector<8x128xf32>, vector<128x32xf32>, vector<8x32xf32> -> vector<8x32xf32>
    %5 = arith.mulf %0, %0 : vector<8x128xf32>
    %cst_7 = arith.constant dense<0.000000e+00> : vector<8x32xf32>
    %6 = tpu.matmul %5, %1, %cst_7 {dimension_numbers = #tpu.dot_dimension_numbers<[1], [0], [0], [1], [0, 0, 1, 1], [], []>} : vector<8x128xf32>, vector<128x32xf32>, vector<8x32xf32> -> vector<8x32xf32>
    %7 = arith.mulf %4, %4 : vector<8x32xf32>
    %8 = arith.subf %6, %7 : vector<8x32xf32>
    %cst_8 = arith.constant 9.99999974E-6 : f32
    %9 = vector.broadcast %cst_8 : f32 to vector<8x32xf32>
    %10 = arith.addf %8, %9 : vector<8x32xf32>
    %11 = math.rsqrt %10 : vector<8x32xf32>
    %cst_9 = arith.constant dense<0.000000e+00> : vector<8x128xf32>
    %12 = tpu.matmul %11, %2, %cst_9 {dimension_numbers = #tpu.dot_dimension_numbers<[1], [0], [0], [1], [0, 0, 1, 1], [], []>} : vector<8x32xf32>, vector<32x128xf32>, vector<8x128xf32> -> vector<8x128xf32>
    %13 = arith.mulf %4, %11 : vector<8x32xf32>
    %cst_10 = arith.constant dense<0.000000e+00> : vector<8x128xf32>
    %14 = tpu.matmul %13, %2, %cst_10 {dimension_numbers = #tpu.dot_dimension_numbers<[1], [0], [0], [1], [0, 0, 1, 1], [], []>} : vector<8x32xf32>, vector<32x128xf32>, vector<8x128xf32> -> vector<8x128xf32>
    %15 = vector.broadcast %3 : vector<1x128xf32> to vector<8x128xf32>
    %16 = arith.subf %15, %14 : vector<8x128xf32>
    %17 = arith.mulf %0, %12 : vector<8x128xf32>
    %18 = arith.addf %17, %16 : vector<8x128xf32>
    %cst_11 = arith.constant 5.000000e-01 : f32
    %19 = vector.broadcast %cst_11 : f32 to vector<8x128xf32>
    %20 = arith.mulf %19, %18 : vector<8x128xf32>
    %21 = math.tanh %20 : vector<8x128xf32>
    %cst_12 = arith.constant 1.000000e+00 : f32
    %22 = vector.broadcast %cst_12 : f32 to vector<8x128xf32>
    %23 = arith.addf %21, %22 : vector<8x128xf32>
    %cst_13 = arith.constant 5.000000e-01 : f32
    %24 = vector.broadcast %cst_13 : f32 to vector<8x128xf32>
    %25 = arith.mulf %24, %23 : vector<8x128xf32>
    %26 = arith.mulf %18, %25 : vector<8x128xf32>
    %c0_14 = arith.constant 0 : index
    %c0_15 = arith.constant 0 : index
    %27 = vector.load %arg2[%c0_14, %c0_15] : memref<8x64xf32, #tpu.memory_space<vmem>>, vector<8x64xf32>
    %cst_16 = arith.constant 5.000000e-01 : f32
    %28 = vector.broadcast %cst_16 : f32 to vector<8x64xf32>
    %29 = arith.mulf %28, %27 : vector<8x64xf32>
    %30 = math.tanh %29 : vector<8x64xf32>
    %cst_17 = arith.constant 1.000000e+00 : f32
    %31 = vector.broadcast %cst_17 : f32 to vector<8x64xf32>
    %32 = arith.addf %30, %31 : vector<8x64xf32>
    %cst_18 = arith.constant 5.000000e-01 : f32
    %33 = vector.broadcast %cst_18 : f32 to vector<8x64xf32>
    %34 = arith.mulf %33, %32 : vector<8x64xf32>
    %35 = arith.mulf %27, %34 : vector<8x64xf32>
    %36 = arith.truncf %35 : vector<8x64xf32> to vector<8x64xbf16>
    %c0_19 = arith.constant 0 : index
    %c0_20 = arith.constant 0 : index
    %37 = vector.load %arg7[%c0_19, %c0_20] : memref<64x128xbf16, #tpu.memory_space<vmem>>, vector<64x128xbf16>
    %cst_21 = arith.constant dense<0.000000e+00> : vector<8x128xf32>
    %38 = tpu.matmul %36, %37, %cst_21 {dimension_numbers = #tpu.dot_dimension_numbers<[1], [0], [0], [1], [0, 0, 1, 1], [], []>} : vector<8x64xbf16>, vector<64x128xbf16>, vector<8x128xf32> -> vector<8x128xf32>
    %39 = arith.addf %26, %38 : vector<8x128xf32>
    %c0_22 = arith.constant 0 : index
    %c0_23 = arith.constant 0 : index
    %40 = vector.load %arg8[%c0_22, %c0_23] : memref<1x128xf32, #tpu.memory_space<vmem>>, vector<1x128xf32>
    %41 = vector.broadcast %40 : vector<1x128xf32> to vector<8x128xf32>
    %42 = arith.addf %39, %41 : vector<8x128xf32>
    %c0_24 = arith.constant 0 : index
    %c0_25 = arith.constant 0 : index
    %43 = vector.load %arg5[%c0_24, %c0_25] : memref<32x128xf32, #tpu.memory_space<vmem>>, vector<32x128xf32>
    %c0_26 = arith.constant 0 : index
    %c0_27 = arith.constant 0 : index
    %44 = vector.load %arg9[%c0_26, %c0_27] : memref<1x128xf32, #tpu.memory_space<vmem>>, vector<1x128xf32>
    %cst_28 = arith.constant dense<0.000000e+00> : vector<8x32xf32>
    %45 = tpu.matmul %42, %1, %cst_28 {dimension_numbers = #tpu.dot_dimension_numbers<[1], [0], [0], [1], [0, 0, 1, 1], [], []>} : vector<8x128xf32>, vector<128x32xf32>, vector<8x32xf32> -> vector<8x32xf32>
    %46 = arith.mulf %42, %42 : vector<8x128xf32>
    %cst_29 = arith.constant dense<0.000000e+00> : vector<8x32xf32>
    %47 = tpu.matmul %46, %1, %cst_29 {dimension_numbers = #tpu.dot_dimension_numbers<[1], [0], [0], [1], [0, 0, 1, 1], [], []>} : vector<8x128xf32>, vector<128x32xf32>, vector<8x32xf32> -> vector<8x32xf32>
    %48 = arith.mulf %45, %45 : vector<8x32xf32>
    %49 = arith.subf %47, %48 : vector<8x32xf32>
    %cst_30 = arith.constant 9.99999974E-6 : f32
    %50 = vector.broadcast %cst_30 : f32 to vector<8x32xf32>
    %51 = arith.addf %49, %50 : vector<8x32xf32>
    %52 = math.rsqrt %51 : vector<8x32xf32>
    %cst_31 = arith.constant dense<0.000000e+00> : vector<8x128xf32>
    %53 = tpu.matmul %52, %43, %cst_31 {dimension_numbers = #tpu.dot_dimension_numbers<[1], [0], [0], [1], [0, 0, 1, 1], [], []>} : vector<8x32xf32>, vector<32x128xf32>, vector<8x128xf32> -> vector<8x128xf32>
    %54 = arith.mulf %45, %52 : vector<8x32xf32>
    %cst_32 = arith.constant dense<0.000000e+00> : vector<8x128xf32>
    %55 = tpu.matmul %54, %43, %cst_32 {dimension_numbers = #tpu.dot_dimension_numbers<[1], [0], [0], [1], [0, 0, 1, 1], [], []>} : vector<8x32xf32>, vector<32x128xf32>, vector<8x128xf32> -> vector<8x128xf32>
    %56 = vector.broadcast %44 : vector<1x128xf32> to vector<8x128xf32>
    %57 = arith.subf %56, %55 : vector<8x128xf32>
    %58 = arith.mulf %42, %53 : vector<8x128xf32>
    %59 = arith.addf %58, %57 : vector<8x128xf32>
    %cst_33 = arith.constant 5.000000e-01 : f32
    %60 = vector.broadcast %cst_33 : f32 to vector<8x128xf32>
    %61 = arith.mulf %60, %59 : vector<8x128xf32>
    %62 = math.tanh %61 : vector<8x128xf32>
    %cst_34 = arith.constant 1.000000e+00 : f32
    %63 = vector.broadcast %cst_34 : f32 to vector<8x128xf32>
    %64 = arith.addf %62, %63 : vector<8x128xf32>
    %cst_35 = arith.constant 5.000000e-01 : f32
    %65 = vector.broadcast %cst_35 : f32 to vector<8x128xf32>
    %66 = arith.mulf %65, %64 : vector<8x128xf32>
    %67 = arith.mulf %59, %66 : vector<8x128xf32>
    %68 = arith.addf %0, %67 : vector<8x128xf32>
    %c0_36 = arith.constant 0 : index
    %c0_37 = arith.constant 0 : index
    %69 = vector.load %arg10[%c0_36, %c0_37] : memref<8x128xf32, #tpu.memory_space<vmem>>, vector<8x128xf32>
    tpu.vector_store %arg10[%c0_36, %c0_37], %68 {strides = array<i32>} : memref<8x128xf32, #tpu.memory_space<vmem>>, vector<8x128xf32>,
    return
  }
  func.func @transform_0(%arg0: i32) -> (i32, i32) {
    %c0_i32 = arith.constant 0 : i32
    %c0_i32_0 = arith.constant 0 : i32
    return %arg0, %c0_i32 : i32, i32
  }
  func.func @transform_1(%arg0: i32) -> (i32, i32) {
    %c0_i32 = arith.constant 0 : i32
    %c0_i32_0 = arith.constant 0 : i32
    return %arg0, %c0_i32 : i32, i32
  }
  func.func @transform_2(%arg0: i32) -> (i32, i32) {
    %c0_i32 = arith.constant 0 : i32
    %c0_i32_0 = arith.constant 0 : i32
    %c0_i32_1 = arith.constant 0 : i32
    return %c0_i32, %c0_i32_0 : i32, i32
  }
  func.func @transform_3(%arg0: i32) -> (i32, i32) {
    %c0_i32 = arith.constant 0 : i32
    %c0_i32_0 = arith.constant 0 : i32
    %c0_i32_1 = arith.constant 0 : i32
    return %c0_i32, %c0_i32_0 : i32, i32
  }
  func.func @transform_4(%arg0: i32) -> (i32, i32) {
    %c0_i32 = arith.constant 0 : i32
    %c0_i32_0 = arith.constant 0 : i32
    %c0_i32_1 = arith.constant 0 : i32
    return %c0_i32, %c0_i32_0 : i32, i32
  }
  func.func @transform_5(%arg0: i32) -> (i32, i32) {
    %c0_i32 = arith.constant 0 : i32
    %c0_i32_0 = arith.constant 0 : i32
    %c0_i32_1 = arith.constant 0 : i32
    return %c0_i32, %c0_i32_0 : i32, i32
  }
  func.func @transform_6(%arg0: i32) -> (i32, i32) {
    %c0_i32 = arith.constant 0 : i32
    %c0_i32_0 = arith.constant 0 : i32
    %c0_i32_1 = arith.constant 0 : i32
    return %c0_i32, %c0_i32_0 : i32, i32
  }
  func.func @transform_7(%arg0: i32) -> (i32, i32) {
    %c0_i32 = arith.constant 0 : i32
    %c0_i32_0 = arith.constant 0 : i32
    %c0_i32_1 = arith.constant 0 : i32
    return %c0_i32, %c0_i32_0 : i32, i32
  }
  func.func @transform_8(%arg0: i32) -> (i32, i32) {
    %c0_i32 = arith.constant 0 : i32
    %c0_i32_0 = arith.constant 0 : i32
    %c0_i32_1 = arith.constant 0 : i32
    return %c0_i32, %c0_i32_0 : i32, i32
  }
  func.func @transform_9(%arg0: i32) -> (i32, i32) {
    %c0_i32 = arith.constant 0 : i32
    %c0_i32_0 = arith.constant 0 : i32
    return %arg0, %c0_i32 : i32, i32
  }
}

</mosaic_0001>

<bundles_post_ra>
// kernel: tpu_custom_call.1
= control target key start
LH: loop header
LB: loop body
LE: loop exit
PB: predicated region body
PF: predicated region fallthrough
CT: control target
= control target key end

     0   :  { %14 = vsyncpa [#allocation3], 0  ;;  %s1242_s0 = inlined_call_operand.vmem [shape: f32[16,128], index: 0, kind: input, shape index: {}]   ;;  %s1243_s1 = inlined_call_operand.vmem [shape: f32[16,64], index: 1, kind: input, shape index: {}]   ;;  %s1244_s2 = inlined_call_operand.vmem [shape: f32[128,32], index: 2, kind: input, shape index: {}]   ;;  %s1245_s3 = inlined_call_operand.vmem [shape: f32[32,128], index: 3, kind: input, shape index: {}]   ;;  %s1246_s4 = inlined_call_operand.vmem [shape: f32[32,128], index: 4, kind: input, shape index: {}]   ;;  %s1247_s5 = inlined_call_operand.vmem [shape: f32[1,128], index: 5, kind: input, shape index: {}]   ;;  %s1248_s6 = inlined_call_operand.vmem [shape: bf16[64,128], index: 6, kind: input, shape index: {}]   ;;  %s1249_s7 = inlined_call_operand.vmem [shape: f32[1,128], index: 7, kind: input, shape index: {}]   ;;  %s1250_s8 = inlined_call_operand.vmem [shape: f32[1,128], index: 8, kind: input, shape index: {}]   ;;  %s1251_s9 = inlined_call_operand.hbm [shape: f32[16,128], index: 9, kind: output, shape index: {}]  }
   0x1   :  { %16 = vsyncpa [#allocation3 + $0x1], 0  ;;  %s951_s30 = smov 0   ;;  %s953_s10 = smov 0  }
   0x2   :  { %s955_s11 = smov 0   ;;  %s957_s12 = smov 0  }
   0x3 LB: > { %s972_s13 = sadd.s32 4294967295, %s899_s12   ;;  %s749_s14 = sadd.s32 4294967294, %s899_s12   ;;  %s899_s12 = sphi %s957_s12, %s1257_s12   ;;  %s895_s11 = sphi %s955_s11, %s1256_s11   ;;  %s891_s10 = sphi %s953_s10, %s1255_s10   ;;  %s887_s30 = sphi %s951_s30, %s1254_s30  }
   0x4   : > { %s976_s15 = sadd.s32 1, %s899_s12   ;;  %s228_s16 = sadd.s32 1, %s895_s11 }
   0x5   : > { %s225_s17 = ssub.s32 %s899_s12, %s976_s15  ;;  %p238_p0 = scmp.ne.s32.totalorder %s895_s11, %s891_s10 }
   0x6   : > { %p226_p1 = scmp.eq.s32.totalorder %s225_s17, 0  ;;  %p239_p2 = scmp.eq.s32.totalorder %s972_s13, 1 }
   0x7   : > { %p244_p3 = scmp.ne.s32.totalorder %s891_s10, %s887_s30  ;;  %p245_p4 = scmp.eq.s32.totalorder %s749_s14, 1 }
   0x8   : > { %s987_s18 = scalar_select %p226_p1, %s895_s11, %s228_s16  }
   0x9   : > { %p989_p5 = por %p239_p2, %p238_p0  ;;  %p993_p6 = por %p245_p4, %p244_p3 }
   0xa   : > { %p752_p7 = scmp.ge.s32.totalorder %s899_s12, 1  ;;  %p298_p8 = scmp.lt.s32.totalorder %s899_s12, 3 }
   0xc   : > { %p299_p9 = pnand %p752_p7, %p298_p8 }
   0xd   : > { %p337_p10 = scmp.lt.s32.totalorder (!%p299_p9), %s972_s13, 1  ;;  %s334_s21 = sand.u32 (!%p299_p9), 1, %s891_s10  }
   0xe   : > { %302 = sbr.rel (%p299_p9) target bundleno = 666 (0x29a), region = 56  ;;  %s753_s22 = sshll.u32 (!%p299_p9), %s334_s21, 3 }
   0xf   : > { %s778_s23 = sshll.u32 (!%p299_p9), %s972_s13, 3  ;;  %s336_s26 = scalar_lea.vmem (!%p299_p9), [#allocation2], %s753_s22 }
  0x10   : > { %s673_s25 = scalar_lea.hbm (!%p299_p9), %s1251_s9, %s778_s23  ;;  %s663_s29 = scalar_lea.sflag (!%p299_p9), [#allocation3], %s334_s21 }
  0x11   : > { %s857_s22 = scalar_lea.hbm (!%p299_p9), %s1251_s9, 16 }
  0x13   : > { %v1002_v0 = vld [vmem:[%s1244_s2 + $0x78] sm:$0xff]  ;;  %v1007_v1 = vld [vmem:[%s1244_s2 + $0x70] sm:$0xff]  ;;  %v1014_v2 = vld [vmem:[%s1244_s2 + $0x68] sm:$0xff]  ;;  %s1062_s27 = scalar_select %p337_p10, %s972_s13, 1  ;;  %vm520_vm0 = vcmask 523264   ;;  %vm422_vm3 = vcmask 261120  }
  0x14   : > { %368 = vmatpush.msra.mxu0 %v1002_v0  ;;  %389 = vmatpush.msra.mxu1 %v1002_v0  ;;  %v1021_v3 = vld [vmem:[%s1244_s2 + $0x60] sm:$0xff]  ;;  %v1028_v4 = vld [vmem:[%s1244_s2 + $0x58] sm:$0xff]  ;;  %v1035_v5 = vld [vmem:[%s1244_s2 + $0x50] sm:$0xff] }
  0x15   : > { %v1042_v6 = vld [vmem:[%s1244_s2 + $0x48] sm:$0xff]  ;;  %v1050_v7 = vld [vmem:[%s1244_s2 + $0x40] sm:$0xff]  ;;  %v1057_v8 = vld [vmem:[%s1244_s2 + $0x38] sm:$0xff]  ;;  %s754_s17 = sshll.u32 %s1062_s27, 3  ;;  %s675_s27 = sshll.u32 %s336_s26, 4  ;;  %s676_s27 = int_to_ptr.vmem [resolvable:$true] %s675_s27 }
  0x16   : > { %369 = vmatpush.msra.mxu0 %v1007_v1  ;;  %390 = vmatpush.msra.mxu1 %v1007_v1  ;;  %v1067_v9 = vld [vmem:[%s1244_s2 + $0x30] sm:$0xff]  ;;  %v1074_v10 = vld [vmem:[%s1244_s2 + $0x28] sm:$0xff]  ;;  %v1082_v11 = vld [vmem:[%s1244_s2 + $0x20] sm:$0xff]  ;;  %s340_s28 = scalar_lea.vmem %s1242_s0, %s754_s17 }
  0x17   : > { %v1089_v12 = vld [vmem:[%s1244_s2 + $0x18] sm:$0xff]  ;;  %v1099_v13 = vld [vmem:[%s1244_s2 + $0x10] sm:$0xff]  ;;  %v1103_v14 = vld [vmem:[%s340_s28] sm:$0xff]  ;;  %s344_s28 = scalar_lea.vmem %s1243_s1, %s754_s17 }
  0x18   : > { %370 = vmatpush.msra.mxu0 %v1014_v2  ;;  %391 = vmatpush.msra.mxu1 %v1014_v2  ;;  %v1108_v15 = vld [vmem:[%s1244_s2 + $0x8] sm:$0xff]  ;;  %v1115_v16 = vld [vmem:[%s1244_s2] sm:$0xff]  ;;  %v388_v17 = vmul.f32 %v1103_v14, %v1103_v14  ;;  %v366_v18 = vld [vmem:[%s1245_s3 + $0x18] sm:$0xff] }
  0x19   : > { %462 = vmatpush.msra.mxu3 %v366_v18  ;;  %v365_v19 = vld [vmem:[%s1245_s3 + $0x10] sm:$0xff]  ;;  %v364_v20 = vld [vmem:[%s1245_s3 + $0x8] sm:$0xff]  ;;  %v784_v21 = vld [vmem:[%s1248_s6 + $0x18] sm:$0xff] }
  0x1a   : > { %371 = vmatpush.msra.mxu0 %v1021_v3  ;;  %392 = vmatpush.msra.mxu1 %v1021_v3  ;;  %v363_v22 = vld [vmem:[%s1245_s3] sm:$0xff]  ;;  %v783_v25 = vld [vmem:[%s1248_s6 + $0x10] sm:$0xff]  ;;  %v782_v26 = vld [vmem:[%s1248_s6 + $0x8] sm:$0xff] }
  0x1b   : > { %463 = vmatpush.msra.mxu3 %v365_v19  ;;  %v481_v23 = vld [vmem:[%s344_s28] sm:$0xff]  ;;  %528 = vmatpush.bf16.msra.mxu2 %v784_v21  ;;  %v546_v63 = vld [vmem:[%s1246_s4 + $0x18] sm:$0xff]  ;;  %s677_s28 = sshll.u32 %s673_s25, 4  ;;  %s678_s28 = int_to_ptr.hbm [resolvable:$true] %s677_s28 }
  0x1c   : > { %372 = vmatpush.msra.mxu0 %v1028_v4  ;;  %393 = vmatpush.msra.mxu1 %v1028_v4  ;;  %v482_v24 = vmul.f32 0.5, %v481_v23  ;;  %v781_v28 = vld [vmem:[%s1248_s6] sm:$0xff]  ;;  %s851_s14 = sshra.s32 %s678_s28, 4  ;;  %s852_s14 = int_to_ptr.hbm [resolvable:$true] %s851_s14 }
  0x1d   : > { %464 = vmatpush.msra.mxu3 %v364_v20  ;;  %v824_v48 = vld [vmem:[%s1247_s5] ss:$0 sm:$0xff]  ;;  %s853_s13 = scalar_lea.hbm %s852_s14, 8  ;;  %p858_p0 = scmp.lt.s32.totalorder %s852_s14, %s1251_s9 }
  0x1e   : > { %373 = vmatpush.msra.mxu0 %v1035_v5  ;;  %394 = vmatpush.msra.mxu1 %v1035_v5  ;;  %827 = vtanh.f32 %v482_v24  ;;  %v825_v59 = vld [vmem:[%s1249_s7] ss:$0 sm:$0xff]  ;;  %p854_p11 = scmp.ne.s32.totalorder %s852_s14, %s853_s13  ;;  %p859_p1 = scmp.lt.s32.totalorder %s857_s22, %s853_s13 }
  0x1f   : > { %465 = vmatpush.msra.mxu3 %v363_v22  ;;  %529 = vmatpush.bf16.msra.mxu2 %v783_v25 }
  0x20   : > { %374 = vmatpush.msra.mxu0 %v1042_v6  ;;  %395 = vmatpush.msra.mxu1 %v1042_v6  ;;  %p855_p12 = pnand %p854_p11, %p989_p5  ;;  %p860_p2 = por %p859_p1, %p858_p0 }
  0x21   : > { %548 = vmatpush.msrb.mxu3 %v1002_v0 }
  0x22   : > { %375 = vmatpush.msra.mxu0 %v1050_v7  ;;  %396 = vmatpush.msra.mxu1 %v1050_v7  ;;  %p856_p13 = pneg %p855_p12 }
  0x23   : > { %549 = vmatpush.msrb.mxu3 %v1007_v1  ;;  %530 = vmatpush.bf16.msra.mxu2 %v782_v26 }
  0x24   : > { %376 = vmatpush.msra.mxu0 %v1057_v8  ;;  %397 = vmatpush.msra.mxu1 %v1057_v8  ;;  %v828_v27 = vpop.eup %827  ;;  %p861_p3 = pnand %p860_p2, %p856_p13 }
  0x25   : > { %550 = vmatpush.msrb.mxu3 %v1014_v2  ;;  %v484_v29 = vadd.f32 1.0, %v828_v27 }
  0x26   : > { %377 = vmatpush.msra.mxu0 %v1067_v9  ;;  %398 = vmatpush.msra.mxu1 %v1067_v9 }
  0x27   : > { %551 = vmatpush.msrb.mxu3 %v1021_v3  ;;  %v485_v33 = vmul.f32 0.5, %v484_v29  ;;  %531 = vmatpush.bf16.msra.mxu2 %v781_v28 }
  0x28   : > { %378 = vmatpush.msra.mxu0 %v1074_v10  ;;  %399 = vmatpush.msra.mxu1 %v1074_v10 }
  0x29   : > { %552 = vmatpush.msrb.mxu3 %v1028_v4  ;;  %v486_v35 = vmul.f32 %v485_v33, %v481_v23 }
  0x2a   : > { %379 = vmatpush.msra.mxu0 %v1082_v11  ;;  %400 = vmatpush.msra.mxu1 %v1082_v11 }
  0x2b   : > { %569 = vmatpush.msrb.mxu2 %v1002_v0  ;;  %553 = vmatpush.msrb.mxu3 %v1035_v5  ;;  %v487_v37 = vpack.c.bf16 %v486_v35, %v486_v35  ;;  %v545_v0 = vld [vmem:[%s1246_s4 + $0x10] sm:$0xff] }
  0x2c   : > { %380 = vmatpush.msra.mxu0 %v1089_v12  ;;  %401 = vmatpush.msra.mxu1 %v1089_v12 }
  0x2d   : > { %570 = vmatpush.msrb.mxu2 %v1007_v1  ;;  %554 = vmatpush.msrb.mxu3 %v1042_v6  ;;  %v544_v1 = vld [vmem:[%s1246_s4 + $0x8] sm:$0xff] }
  0x2e   : > { %381 = vmatpush.msra.mxu0 %v1099_v13  ;;  %402 = vmatpush.msra.mxu1 %v1099_v13 }
  0x2f   : > { %774 = vmatmul.msk.bf16.vlgmr.msra.gmra.mxu2 %vm520_vm0, %v487_v37  ;;  %555 = vmatpush.msrb.mxu3 %v1050_v7 }
  0x30   : > { %382 = vmatpush.msra.mxu0 %v1108_v15  ;;  %403 = vmatpush.msra.mxu1 %v1108_v15 }
  0x31   : > { %571 = vmatpush.msrb.mxu2 %v1014_v2  ;;  %556 = vmatpush.msrb.mxu3 %v1057_v8  ;;  %v543_v2 = vld [vmem:[%s1246_s4] sm:$0xff] }
  0x32   : > { %383 = vmatpush.msra.mxu0 %v1115_v16  ;;  %404 = vmatpush.msra.mxu1 %v1115_v16 }
  0x33   : > { %384 = vmatmul.f32.vlgmr.msra.gmra.mxu0 %v1103_v14  ;;  %405 = vmatmul.f32.vlgmr.msra.gmra.mxu1 %v388_v17  ;;  %v826_v17 = vld [vmem:[%s1250_s8] ss:$0 sm:$0xff] }
  0x34   : > { %438 = vmatpush.msrb.mxu0 %v366_v18  ;;  %572 = vmatpush.msrb.mxu2 %v1021_v3 }
  0x35   : > { %557 = vmatpush.msrb.mxu3 %v1067_v9  ;;  %641 = vmatpush.msrb.mxu1 %v546_v63 }
  0x36   : > { %439 = vmatpush.msrb.mxu0 %v365_v19  ;;  %573 = vmatpush.msrb.mxu2 %v1028_v4 }
  0x37   : > { %558 = vmatpush.msrb.mxu3 %v1074_v10  ;;  %642 = vmatpush.msrb.mxu1 %v545_v0 }
  0x38   : > { %440 = vmatpush.msrb.mxu0 %v364_v20  ;;  %574 = vmatpush.msrb.mxu2 %v1035_v5 }
  0x39   : > { %559 = vmatpush.msrb.mxu3 %v1082_v11  ;;  %643 = vmatpush.msrb.mxu1 %v544_v1 }
  0x3a   : > { %441 = vmatpush.msrb.mxu0 %v363_v22  ;;  %575 = vmatpush.msrb.mxu2 %v1042_v6 }
  0x3b   : > { %560 = vmatpush.msrb.mxu3 %v1089_v12  ;;  %644 = vmatpush.msrb.mxu1 %v543_v2 }
  0x3c   : > { %576 = vmatpush.msrb.mxu2 %v1050_v7  ;;  %617 = vmatpush.msra.mxu0 %v546_v63 }
  0x3d   : > { %561 = vmatpush.msrb.mxu3 %v1099_v13 }
  0x3e   : > { %577 = vmatpush.msrb.mxu2 %v1057_v8  ;;  %618 = vmatpush.msra.mxu0 %v545_v0 }
  0x3f   : > { %562 = vmatpush.msrb.mxu3 %v1108_v15 }
  0x40   : > { %578 = vmatpush.msrb.mxu2 %v1067_v9  ;;  %619 = vmatpush.msra.mxu0 %v544_v1 }
  0x41   : > { %563 = vmatpush.msrb.mxu3 %v1115_v16 }
  0x42   : > { %579 = vmatpush.msrb.mxu2 %v1074_v10  ;;  %620 = vmatpush.msra.mxu0 %v543_v2 }
  0x44   : > { %580 = vmatpush.msrb.mxu2 %v1082_v11 }
  0x46   : > { %581 = vmatpush.msrb.mxu2 %v1089_v12 }
  0x48   : > { %582 = vmatpush.msrb.mxu2 %v1099_v13 }
  0x4a   : > { %583 = vmatpush.msrb.mxu2 %v1108_v15 }
  0x4c   : > { %584 = vmatpush.msrb.mxu2 %v1115_v16 }
  0xb0   : > { %v385_v30 = vpop.f32.mrf.mxu0  ;;  %v406_v31 = vpop.f32.mrf.mxu1 }
  0xb1   : > { %v409_v32 = vmul.f32 %v385_v30, %v385_v30 }
  0xb2   : > { %v533_v46 = vpop.f32.mrf.mxu2 }
  0xb3   : > { %v410_v34 = vsub.f32 %v406_v31, %v409_v32 }
  0xb5   : > { %v411_v36 = vadd.f32 1e-05, %v410_v34 }
  0xb7   : > { %829 = vrsqrt.f32 %v411_v36  ;;  %vm418_vm2 = vweird.f32 %v411_v36 }
  0xba   : > { %v535_v47 = vpop.f32.mrf.mxu2 }
  0xbd   : > { %v830_v38 = vpop.eup %829 }
  0xbe   : > { %v413_v39 = vmul.f32 %v830_v38, %v411_v36  ;;  %vm419_vm1 = vweird.f32 %v830_v38 }
  0xbf   : > { %vm420_vm4 = vmor %vm418_vm2, %vm419_vm1 }
  0xc0   : > { %v414_v40 = vmul.f32 %v830_v38, %v413_v39 }
  0xc2   : > { %v415_v41 = vmul.f32 0.5, %v414_v40 }
  0xc4   : > { %v416_v42 = vsub.f32 1.5, %v415_v41 }
  0xc6   : > { %v417_v43 = vmul.f32 %v830_v38, %v416_v42 }
  0xc8   : > { %v421_v44 = vsel %vm420_vm4, %v830_v38, %v417_v43 }
  0xc9   : > { %756 = vmatmul.msk.f32.vlgmr.msrb.gmra.mxu0 %vm422_vm3, %v421_v44  ;;  %v446_v45 = vmul.f32 %v421_v44, %v385_v30 }
  0xcb   : > { %757 = vmatmul.msk.f32.vlgmr.msra.gmra.mxu3 %vm422_vm3, %v446_v45 }
 0x146   : > { %v443_v49 = vpop.f32.mrf.mxu0 }
 0x147   : > { %v474_v51 = vmul.f32 %v443_v49, %v1103_v14 }
 0x14e   : > { %v467_v50 = vpop.f32.mrf.mxu3 }
 0x14f   : > { %v473_v52 = vsub.f32 %v824_v48, %v467_v50 }
 0x151   : > { %v475_v53 = vadd.f32 %v474_v51, %v473_v52 }
 0x153   : > { %v476_v54 = vmul.f32 0.5, %v475_v53 }
 0x155   : > { %831 = vtanh.f32 %v476_v54 }
 0x15b   : > { %v832_v55 = vpop.eup %831 }
 0x15c   : > { %v478_v56 = vadd.f32 1.0, %v832_v55 }
 0x15e   : > { %v479_v57 = vmul.f32 0.5, %v478_v56 }
 0x160   : > { %v480_v58 = vmul.f32 %v479_v57, %v475_v53 }
 0x162   : > { %v537_v60 = vadd.f32 %v533_v46, %v480_v58 }
 0x164   : > { %v542_v61 = vadd.f32 %v825_v59, %v537_v60 }
 0x166   : > { %564 = vmatmul.f32.vlgmr.msrb.gmra.mxu3 %v542_v61  ;;  %v568_v62 = vmul.f32 %v542_v61, %v542_v61 }
 0x168   : > { %585 = vmatmul.f32.vlgmr.msrb.gmra.mxu2 %v568_v62 }
 0x1e9   : > { %v565_v3 = vpop.f32.mrf.mxu3 }
 0x1ea   : > { %v589_v4 = vmul.f32 %v565_v3, %v565_v3 }
 0x1eb   : > { %v586_v5 = vpop.f32.mrf.mxu2 }
 0x1ec   : > { %v590_v6 = vsub.f32 %v586_v5, %v589_v4 }
 0x1ee   : > { %v591_v7 = vadd.f32 1e-05, %v590_v6 }
 0x1f0   : > { %833 = vrsqrt.f32 %v591_v7  ;;  %vm598_vm6 = vweird.f32 %v591_v7 }
 0x1f6   : > { %v834_v8 = vpop.eup %833 }
 0x1f7   : > { %v593_v9 = vmul.f32 %v834_v8, %v591_v7  ;;  %vm599_vm5 = vweird.f32 %v834_v8 }
 0x1f8   : > { %vm600_vm7 = vmor %vm598_vm6, %vm599_vm5 }
 0x1f9   : > { %v594_v10 = vmul.f32 %v834_v8, %v593_v9 }
 0x1fb   : > { %v595_v11 = vmul.f32 0.5, %v594_v10 }
 0x1fd   : > { %v596_v12 = vsub.f32 1.5, %v595_v11 }
 0x1ff   : > { %v597_v13 = vmul.f32 %v834_v8, %v596_v12 }
 0x201   : > { %v601_v15 = vsel %vm600_vm7, %v834_v8, %v597_v13 }
 0x202   : > { %775 = vmatmul.msk.f32.vlgmr.msra.gmra.mxu0 %vm422_vm3, %v601_v15  ;;  %v625_v16 = vmul.f32 %v601_v15, %v565_v3 }
 0x204   : > { %776 = vmatmul.msk.f32.vlgmr.msrb.gmra.mxu1 %vm422_vm3, %v625_v16 }
 0x27f   : > { %v622_v18 = vpop.f32.mrf.mxu0 }
 0x280   : > { %v653_v20 = vmul.f32 %v622_v18, %v542_v61 }
 0x281   : > { %v646_v19 = vpop.f32.mrf.mxu1 }
 0x282   : > { %v652_v21 = vsub.f32 %v826_v17, %v646_v19 }
 0x284   : > { %v654_v22 = vadd.f32 %v653_v20, %v652_v21 }
 0x286   : > { %v655_v23 = vmul.f32 0.5, %v654_v22 }
 0x288   : > { %835 = vtanh.f32 %v655_v23 }
 0x28e   : > { %v836_v24 = vpop.eup %835 }
 0x28f   : > { %v657_v25 = vadd.f32 1.0, %v836_v24 }
 0x291   : > { %v658_v26 = vmul.f32 0.5, %v657_v25 }
 0x293   : > { %v659_v27 = vmul.f32 %v658_v26, %v654_v22 }
 0x295   : > { %v660_v28 = vadd.f32 %v659_v27, %v1103_v14 }
 0x297   : > { %661 = vst [vmem:[%s336_s26] sm:$0xff] %v660_v28 }
 0x298   : > { %864 = shalt.err (!%p861_p3)
}
 0x299   : > { %785 = dma.vmem_to_hbm [thread:$0]  (%p989_p5), %s676_s27, 128, %s678_s28, %s663_s29  }
 0x29a PF: > { %p791_p4 = scmp.ge.s32.totalorder %s899_s12, 2  ;;  %s689_s21 = sand.u32 1, %s887_s30  }
 0x29b   : > { %s690_s25 = scalar_lea.sflag [#allocation3], %s689_s21 }
 0x29c   : > { %p788_p7 = pnand %p791_p4, %p993_p6 }
 0x29e   : > { %p789_p8 = pneg %p788_p7 }
 0x2a0   : > { %882 = dma.done.wait (%p789_p8), %s690_s25, 128  }
 0x2a1   : > { %884 = vsyncadd (%p789_p8), %s690_s25, 4294967168  ;;  %p19_p9 = scmp.ge.s32.totalorder %s976_s15, 4   ;;  %s1254_s30 = smov %s891_s10 }
 0x2a2   : > { %s1255_s10 = smov %s895_s11  ;;  %s1256_s11 = smov %s987_s18 }
 0x2a3   : > { %s1257_s12 = smov %s976_s15  ;;  %21 = sbr.rel (!%p19_p9) target bundleno = 3 (0x3), region = 94 }
 0x2a8   :  { %696 = vsyncpa [#allocation3], 1 }
 0x2a9   :  { %698 = vsyncpa [#allocation3 + $0x1], 1 }

</bundles_post_ra>
